<compile_context>
chip_gen: v7x
topology: tpu7x:2x2x1
jax: 0.10.0
libtpu: 0.0.40
codegen_flags: <defaults>
</compile_context>

<pallas_src>
import functools

import jax
import jax.numpy as jnp
from jax.experimental import pallas as pl
from jax.experimental.pallas import tpu as pltpu


# ----------------------------------------------------------------------------
# Generation-aware VMEM budgeting.
# ----------------------------------------------------------------------------
def _vmem_limits():
    """Return (physical_vmem_bytes, vmem_limit_bytes) for the current chip."""
    try:
        phys = int(pltpu.get_tpu_info().vmem_capacity_bytes)
    except Exception:
        phys = 64 << 20  # conservative default (v7x per-TC VMEM)
    # ~75% of physical, capped at 100 MiB, floored at 32 MiB:
    #   v5e/v6e (128 MiB phys) -> 96 MiB limit;  v7x (64 MiB phys) -> 48 MiB.
    limit = max(32 << 20, min(phys * 3 // 4, 100 << 20))
    return phys, limit


def _pick_l_tile(C, L):
    """Lane-dense (multiple-of-128) tile over L from a ~2 MiB f32 byte budget."""
    target_bytes = 2 << 20
    lt = max(128, (target_bytes // (C * 4)) // 128 * 128)
    lt = min(lt, ((L + 127) // 128) * 128)
    return lt


# ----------------------------------------------------------------------------
# Shared gate computation: one fused (C, 2) MLP chain instead of two passes.
# ----------------------------------------------------------------------------
def _fused_gate(max_c, avg_c, w1, b1, w2, b2):
    """max_c/avg_c: (C,1); w1: (H,C); b1: (H,1); w2: (C,H); b2: (C,1) -> (C,1)."""
    C = max_c.shape[0]
    # Stack the two pooled column vectors into a (C, 2) RHS (no concat needed).
    col = jax.lax.broadcasted_iota(jnp.int32, (C, 2), 1)
    pooled = jnp.where(col == 0, max_c, avg_c)                              # (C, 2)
    h = jnp.dot(w1, pooled, preferred_element_type=jnp.float32) + b1        # (H, 2)
    h = jnp.maximum(h, 0.0)
    y = jnp.dot(w2, h, preferred_element_type=jnp.float32) + b2             # (C, 2)
    # Sum the max/avg branches (bias counted twice, matching the PyTorch code)
    # and apply the final ReLU.
    return jnp.maximum(y[:, 0:1] + y[:, 1:2], 0.0)                          # (C, 1)


# ----------------------------------------------------------------------------
# Path 1: whole-array-resident kernel (x small enough for the VMEM budget).
# One HBM read + one HBM write of x.
# ----------------------------------------------------------------------------
def _temporal2_resident_kernel(x_ref, w1_ref, b1_ref, w2_ref, b2_ref, o_ref,
                               *, inv_l):
    x = x_ref[...]                                            # (C, L)
    xf = x.astype(jnp.float32)
    max_c = jnp.max(xf, axis=1, keepdims=True)                # (C, 1)
    avg_c = jnp.sum(xf, axis=1, keepdims=True) * inv_l        # (C, 1)
    gate = _fused_gate(max_c, avg_c,
                       w1_ref[...], b1_ref[...], w2_ref[...], b2_ref[...])
    if x.dtype == jnp.bfloat16:
        o_ref[...] = gate.astype(jnp.bfloat16) * x
    else:
        o_ref[...] = (gate * xf).astype(o_ref.dtype)


# ----------------------------------------------------------------------------
# Path 2a: pooling + gate kernel.  grid = (cdiv(L, l_tile),), "arbitrary".
# Per-tile XLU reduce -> (C,1) accumulators; fused MLP at the last tile.
# ----------------------------------------------------------------------------
def _temporal2_pool_gate_kernel(x_ref, w1_ref, b1_ref, w2_ref, b2_ref,
                                gate_ref, max_acc, sum_acc,
                                *, inv_l, l_tile, rem):
    lt = pl.program_id(0)
    n_lt = pl.num_programs(0)

    x = x_ref[...].astype(jnp.float32)                        # (C, l_tile)

    if rem:
        # cdiv grid: mask the out-of-bounds lanes of the (padded) last tile.
        lane = jax.lax.broadcasted_iota(jnp.int32, x.shape, 1)
        limit = jnp.where(lt == n_lt - 1, rem, l_tile)
        valid = lane < limit
        x_max_in = jnp.where(valid, x, -jnp.inf)
        x_sum_in = jnp.where(valid, x, 0.0)
    else:
        x_max_in = x
        x_sum_in = x

    tile_max = jnp.max(x_max_in, axis=1, keepdims=True)       # (C, 1)  XLU
    tile_sum = jnp.sum(x_sum_in, axis=1, keepdims=True)       # (C, 1)  XLU

    @pl.when(lt == 0)
    def _init():
        max_acc[...] = tile_max
        sum_acc[...] = tile_sum

    @pl.when(lt > 0)
    def _accumulate():
        max_acc[...] = jnp.maximum(max_acc[...], tile_max)
        sum_acc[...] = sum_acc[...] + tile_sum

    @pl.when(lt == n_lt - 1)
    def _finalize():
        max_c = max_acc[...]
        avg_c = sum_acc[...] * inv_l
        gate_ref[...] = _fused_gate(
            max_c, avg_c,
            w1_ref[...], b1_ref[...], w2_ref[...], b2_ref[...])


# ----------------------------------------------------------------------------
# Path 2b: scale kernel.  grid = (cdiv(L, l_tile),), "parallel" (v7x megacore).
# Out-of-range lanes of a padded last block are clipped on writeback.
# ----------------------------------------------------------------------------
def _temporal2_scale_kernel(gate_ref, x_ref, o_ref):
    x = x_ref[...]                                            # (C, l_tile)
    if x.dtype == jnp.bfloat16:
        o_ref[...] = gate_ref[...].astype(jnp.bfloat16) * x
    else:
        o_ref[...] = (gate_ref[...] * x.astype(jnp.float32)).astype(o_ref.dtype)


# ----------------------------------------------------------------------------
# Wrapper.
# ----------------------------------------------------------------------------
def temporal_2_forward(x, w1, b1, w2, b2, *, l_tile=None, force_tiled=False):
    """x: (C, L); w1: (H, C); b1: (H,); w2: (C, H); b2: (C,) (torch Linear layout)."""
    C, L = x.shape
    H = w1.shape[0]
    w1 = w1.astype(jnp.float32)
    w2 = w2.astype(jnp.float32)
    b1c = b1.astype(jnp.float32).reshape(H, 1)
    b2c = b2.astype(jnp.float32).reshape(C, 1)

    itemsize = jnp.dtype(x.dtype).itemsize
    param_bytes = (H * C + H + C * H + C) * 4
    _, vmem_limit = _vmem_limits()

    # Dtype-aware resident footprint: x + out in storage dtype plus the f32
    # working copy / elementwise temporaries (~8 B/elem), plus the parameters.
    resident_bytes = C * L * (2 * itemsize + 8) + param_bytes
    use_resident = (not force_tiled) and (resident_bytes <= vmem_limit // 2)

    if use_resident:
        kernel = functools.partial(_temporal2_resident_kernel, inv_l=1.0 / L)
        return pl.pallas_call(
            kernel,
            out_shape=jax.ShapeDtypeStruct((C, L), x.dtype),
            in_specs=[pl.BlockSpec(memory_space=pltpu.MemorySpace.VMEM)] * 5,
            out_specs=pl.BlockSpec(memory_space=pltpu.MemorySpace.VMEM),
            compiler_params=pltpu.CompilerParams(vmem_limit_bytes=vmem_limit),
            cost_estimate=pl.CostEstimate(
                flops=3 * C * L + 8 * C * H,
                transcendentals=0,
                bytes_accessed=2 * C * L * itemsize + param_bytes),
        )(x, w1, b1c, w2, b2c)

    # ---- Tiled path: two pallas_calls (pool+gate, then parallel scale). ----
    if l_tile is None:
        l_tile = _pick_l_tile(C, L)
    l_tile = max(128, (l_tile // 128) * 128)
    n_lt = pl.cdiv(L, l_tile)
    rem = L % l_tile  # 0 -> no masking needed

    pool_kernel = functools.partial(
        _temporal2_pool_gate_kernel, inv_l=1.0 / L, l_tile=l_tile, rem=rem)

    gate = pl.pallas_call(
        pool_kernel,
        out_shape=jax.ShapeDtypeStruct((C, 1), jnp.float32),
        grid=(n_lt,),
        in_specs=[
            pl.BlockSpec((C, l_tile), lambda l: (0, l)),   # x tiles
            pl.BlockSpec((H, C), lambda l: (0, 0)),        # w1
            pl.BlockSpec((H, 1), lambda l: (0, 0)),        # b1
            pl.BlockSpec((C, H), lambda l: (0, 0)),        # w2
            pl.BlockSpec((C, 1), lambda l: (0, 0)),        # b2
        ],
        out_specs=pl.BlockSpec((C, 1), lambda l: (0, 0)),  # gate (written once)
        scratch_shapes=[
            pltpu.VMEM((C, 1), jnp.float32),               # running max
            pltpu.VMEM((C, 1), jnp.float32),               # running sum
        ],
        compiler_params=pltpu.CompilerParams(
            dimension_semantics=("arbitrary",),
            vmem_limit_bytes=vmem_limit),
        cost_estimate=pl.CostEstimate(
            flops=2 * C * L + 8 * C * H,
            transcendentals=0,
            bytes_accessed=C * L * itemsize + param_bytes + C * 4),
    )(x, w1, b1c, w2, b2c)

    return pl.pallas_call(
        _temporal2_scale_kernel,
        out_shape=jax.ShapeDtypeStruct((C, L), x.dtype),
        grid=(n_lt,),
        in_specs=[
            pl.BlockSpec((C, 1), lambda l: (0, 0)),        # gate (tiny, resident)
            pl.BlockSpec((C, l_tile), lambda l: (0, l)),   # x tiles
        ],
        out_specs=pl.BlockSpec((C, l_tile), lambda l: (0, l)),
        compiler_params=pltpu.CompilerParams(
            dimension_semantics=("parallel",),             # megacore shard on v7x
            vmem_limit_bytes=vmem_limit),
        cost_estimate=pl.CostEstimate(
            flops=C * L,
            transcendentals=0,
            bytes_accessed=2 * C * L * itemsize + C * 4),
    )(gate, x)


# ----------------------------------------------------------------------------
# Pure-JAX reference mirroring the PyTorch forward exactly.
# ----------------------------------------------------------------------------
def temporal_2_reference(x, w1, b1, w2, b2):
    max_c = jnp.max(x, axis=1)                        # (C,)
    avg_c = jnp.mean(x, axis=1)                       # (C,)

    def linear_seq(v):                                # v: (1, C)
        h = jnp.maximum(v @ w1.T + b1, 0.0)           # (1, H)
        return h @ w2.T + b2                          # (1, C)

    out = linear_seq(max_c[None, :]) + linear_seq(avg_c[None, :])
    output_sig = jnp.maximum(out, 0.0)                # (1, C)
    return output_sig.reshape(-1, 1) * x              # (C, L)


if __name__ == "__main__":
    channels, r = 32, 4
    hidden = channels // r

    key = jax.random.PRNGKey(0)
    kx1, kx2, kx3, k1, k2, k3, k4 = jax.random.split(key, 7)

    # Deterministic synthetic parameters (torch Linear layout: weight = (out, in)).
    w1 = jax.random.normal(k1, (hidden, channels), dtype=jnp.float32) * 0.1
    b1 = jax.random.normal(k2, (hidden,), dtype=jnp.float32) * 0.1
    w2 = jax.random.normal(k3, (channels, hidden), dtype=jnp.float32) * 0.1
    b2 = jax.random.normal(k4, (channels,), dtype=jnp.float32) * 0.1

    # 1) Small sequence -> whole-array-resident path (1 read + 1 write of x).
    L1 = 128
    x1 = jax.random.normal(kx1, (channels, L1), dtype=jnp.float32)
    out1 = jax.block_until_ready(temporal_2_forward(x1, w1, b1, w2, b2))
    ref1 = temporal_2_reference(x1, w1, b1, w2, b2)
    assert out1.shape == (channels, L1)
    assert jnp.allclose(out1, ref1, atol=1e-5, rtol=1e-5), "resident path mismatch"

    # 2) Non-divisible L with a forced small tile -> two-call tiled path with a
    #    masked last tile (pool+gate reduction call, then parallel scale call).
    L2 = 300
    x2 = jax.random.normal(kx2, (channels, L2), dtype=jnp.float32)
    out2 = jax.block_until_ready(
        temporal_2_forward(x2, w1, b1, w2, b2, l_tile=128, force_tiled=True))
    ref2 = temporal_2_reference(x2, w1, b1, w2, b2)
    assert out2.shape == (channels, L2)
    assert jnp.allclose(out2, ref2, atol=2e-5, rtol=2e-5), "tiled (masked) mismatch"

    # 3) Divisible L, forced tiled -> exercises the unmasked accumulate branch.
    L3 = 384
    x3 = jax.random.normal(kx3, (channels, L3), dtype=jnp.float32)
    out3 = jax.block_until_ready(
        temporal_2_forward(x3, w1, b1, w2, b2, l_tile=128, force_tiled=True))
    ref3 = temporal_2_reference(x3, w1, b1, w2, b2)
    assert out3.shape == (channels, L3)
    assert jnp.allclose(out3, ref3, atol=2e-5, rtol=2e-5), "tiled (even) mismatch"

    print("KERNEL_OK")
</pallas_src>

<mosaic_0001>
module attributes {stable_mosaic.version = 11 : i64} {
  func.func @_temporal2_resident_kernel(%arg0: memref<32x128xf32, #tpu.memory_space<vmem>>, %arg1: memref<8x32xf32, #tpu.memory_space<vmem>>, %arg2: memref<8x1xf32, #tpu.memory_space<vmem>>, %arg3: memref<32x8xf32, #tpu.memory_space<vmem>>, %arg4: memref<32x1xf32, #tpu.memory_space<vmem>>, %arg5: memref<32x128xf32, #tpu.memory_space<vmem>>) attributes {dimension_semantics = [], scalar_prefetch = 0 : i64, scratch_operands = 0 : i64, tpu.core_type = #tpu.core_type<tc>} {
    %c0 = arith.constant 0 : index
    %c0_0 = arith.constant 0 : index
    %0 = vector.load %arg0[%c0, %c0_0] : memref<32x128xf32, #tpu.memory_space<vmem>>, vector<32x128xf32>
    %cst = arith.constant dense<0xFF800000> : vector<32xf32>
    %1 = vector.multi_reduction <maximumf>, %0, %cst [1] : vector<32x128xf32> to vector<32xf32>
    %2 = vector.shape_cast %1 : vector<32xf32> to vector<32x1xf32>
    %cst_1 = arith.constant dense<0.000000e+00> : vector<32xf32>
    %3 = vector.multi_reduction <add>, %0, %cst_1 [1] : vector<32x128xf32> to vector<32xf32>
    %4 = vector.shape_cast %3 : vector<32xf32> to vector<32x1xf32>
    %cst_2 = arith.constant 7.812500e-03 : f32
    %5 = vector.broadcast %cst_2 : f32 to vector<32x1xf32>
    %6 = arith.mulf %4, %5 : vector<32x1xf32>
    %c0_3 = arith.constant 0 : index
    %c0_4 = arith.constant 0 : index
    %7 = vector.load %arg1[%c0_3, %c0_4] : memref<8x32xf32, #tpu.memory_space<vmem>>, vector<8x32xf32>
    %c0_5 = arith.constant 0 : index
    %c0_6 = arith.constant 0 : index
    %8 = vector.load %arg2[%c0_5, %c0_6] : memref<8x1xf32, #tpu.memory_space<vmem>>, vector<8x1xf32>
    %c0_7 = arith.constant 0 : index
    %c0_8 = arith.constant 0 : index
    %9 = vector.load %arg3[%c0_7, %c0_8] : memref<32x8xf32, #tpu.memory_space<vmem>>, vector<32x8xf32>
    %c0_9 = arith.constant 0 : index
    %c0_10 = arith.constant 0 : index
    %10 = vector.load %arg4[%c0_9, %c0_10] : memref<32x1xf32, #tpu.memory_space<vmem>>, vector<32x1xf32>
    %11 = tpu.iota {dimensions = array<i32: 1>} : vector<32x2xi32>
    %c0_i32 = arith.constant 0 : i32
    %12 = vector.broadcast %c0_i32 : i32 to vector<32x2xi32>
    %13 = arith.cmpi eq, %11, %12 : vector<32x2xi32>
    %14 = vector.shape_cast %2 : vector<32x1xf32> to vector<32x1xf32>
    %15 = vector.broadcast %14 : vector<32x1xf32> to vector<32x2xf32>
    %16 = vector.shape_cast %6 : vector<32x1xf32> to vector<32x1xf32>
    %17 = vector.broadcast %16 : vector<32x1xf32> to vector<32x2xf32>
    %18 = arith.select %13, %15, %17 : vector<32x2xi1>, vector<32x2xf32>
    %cst_11 = arith.constant dense<0.000000e+00> : vector<8x2xf32>
    %19 = tpu.matmul %7, %18, %cst_11 {dimension_numbers = #tpu.dot_dimension_numbers<[1], [0], [0], [1], [0, 0, 1, 1], [], []>} : vector<8x32xf32>, vector<32x2xf32>, vector<8x2xf32> -> vector<8x2xf32>
    %20 = vector.broadcast %8 : vector<8x1xf32> to vector<8x2xf32>
    %21 = arith.addf %19, %20 : vector<8x2xf32>
    %cst_12 = arith.constant 0.000000e+00 : f32
    %22 = vector.broadcast %cst_12 : f32 to vector<8x2xf32>
    %23 = arith.maximumf %21, %22 : vector<8x2xf32>
    %cst_13 = arith.constant dense<0.000000e+00> : vector<32x2xf32>
    %24 = tpu.matmul %9, %23, %cst_13 {dimension_numbers = #tpu.dot_dimension_numbers<[1], [0], [0], [1], [0, 0, 1, 1], [], []>} : vector<32x8xf32>, vector<8x2xf32>, vector<32x2xf32> -> vector<32x2xf32>
    %25 = vector.broadcast %10 : vector<32x1xf32> to vector<32x2xf32>
    %26 = arith.addf %24, %25 : vector<32x2xf32>
    %27 = vector.extract_strided_slice %26 {offsets = [0, 0], sizes = [32, 1], strides = [1, 1]} : vector<32x2xf32> to vector<32x1xf32>
    %28 = vector.extract_strided_slice %26 {offsets = [0, 1], sizes = [32, 1], strides = [1, 1]} : vector<32x2xf32> to vector<32x1xf32>
    %29 = arith.addf %27, %28 : vector<32x1xf32>
    %cst_14 = arith.constant 0.000000e+00 : f32
    %30 = vector.broadcast %cst_14 : f32 to vector<32x1xf32>
    %31 = arith.maximumf %29, %30 : vector<32x1xf32>
    %32 = vector.broadcast %31 : vector<32x1xf32> to vector<32x128xf32>
    %33 = arith.mulf %32, %0 : vector<32x128xf32>
    %c0_15 = arith.constant 0 : index
    %c0_16 = arith.constant 0 : index
    %34 = vector.load %arg5[%c0_15, %c0_16] : memref<32x128xf32, #tpu.memory_space<vmem>>, vector<32x128xf32>
    tpu.vector_store %arg5[%c0_15, %c0_16], %33 {strides = array<i32>} : memref<32x128xf32, #tpu.memory_space<vmem>>, vector<32x128xf32>,
    return
  }
}

</mosaic_0001>

<bundles_post_ra>
// kernel: tpu_custom_call.1
= control target key start
LH: loop header
LB: loop body
LE: loop exit
PB: predicated region body
PF: predicated region fallthrough
CT: control target
= control target key end

     0   :  { %s518_s0 = inlined_call_operand.vmem [shape: f32[32,128], index: 0, kind: input, shape index: {}]   ;;  %s519_s1 = inlined_call_operand.vmem [shape: f32[8,32], index: 1, kind: input, shape index: {}]   ;;  %s520_s2 = inlined_call_operand.vmem [shape: f32[8,1], index: 2, kind: input, shape index: {}]   ;;  %s521_s3 = inlined_call_operand.vmem [shape: f32[32,8], index: 3, kind: input, shape index: {}]   ;;  %s522_s4 = inlined_call_operand.vmem [shape: f32[32,1], index: 4, kind: input, shape index: {}]   ;;  %s523_s5 = inlined_call_operand.hbm [shape: f32[32,128], index: 5, kind: output, shape index: {}]  }
   0x1   :  { %v443_v0 = vld [vmem:[%s518_s0] sm:$0xff] }
   0x2   :  { %25 = vmax.xlane.f32.xlu1 %v443_v0  ;;  %33 = vadd.xlane.f32.xlu0 %v443_v0 }
   0x3   :  { %10 = vsyncpa [#allocation3], 0  ;;  %v450_v1 = vld [vmem:[%s518_s0 + $0x8] sm:$0xff]  ;;  %v457_v2 = vld [vmem:[%s518_s0 + $0x18] sm:$0xff]  ;;  %v402_v4 = vmov 0.0|0.0   ;;  %vm403_vm0 = vmmov 0   ;;  %v55_v8 = vlaneseq }
   0x4   :  { %v462_v3 = vld [vmem:[%s518_s0 + $0x10] sm:$0xff]  ;;  %362 = vmatprep.subr.bf16.mxu0 %v402_v4  ;;  %v404_v5 = vmov 0.0   ;;  %v46_v6 = vld [vmem:[%s520_s2] sm:$0xff]  ;;  %v405_v7 = vmov 0   ;;  %vm67_vm2 = vcmask 261120   ;;  %vm162_vm3 = vcmask 64512  }
   0x5   :  { %351 = vmatprep.mubr.msk.f32.mxu0 %vm403_vm0, %v404_v5  ;;  %376 = vset.pattern.permute.xlu0 %v405_v7  ;;  %v56_v11 = vand.u32 127, %v55_v8  ;;  %v45_v28 = vld [vmem:[%s519_s1] sm:$0xff]  ;;  %v52_v31 = vld [vmem:[%s522_s4 + $0x8] sm:$0xff]  ;;  %v53_v32 = vld [vmem:[%s522_s4 + $0x10] sm:$0xff]  ;;  %s406_s17 = smov 127  }
   0x6   :  { %27 = vmax.xlane.f32.xlu1 %v450_v1  ;;  %35 = vadd.xlane.f32.xlu0 %v450_v1  ;;  %v47_v29 = vld [vmem:[%s521_s3] sm:$0xff]  ;;  %v54_v33 = vld [vmem:[%s522_s4 + $0x18] sm:$0xff]  ;;  %v48_v39 = vld [vmem:[%s521_s3 + $0x8] sm:$0xff] }
   0x7   :  { %377 = vset.pattern.permute.xlu1 %v405_v7  ;;  %vm57_vm1 = vcmp.eq.s32.totalorder %v56_v11, 0  ;;  %356 = vmatprep.mubr.msk.f32.mxu1 %vm162_vm3, %v47_v29  ;;  %v51_v30 = vld [vmem:[%s522_s4] sm:$0xff]  ;;  %v49_v40 = vld [vmem:[%s521_s3 + $0x10] sm:$0xff]  ;;  %v50_v41 = vld [vmem:[%s521_s3 + $0x18] sm:$0xff]  ;;  %s407_s3 = smov [#allocation2]  }
   0x8   :  { %s317_s18 = sshll.u32 %s407_s3, 4  ;;  %s318_s18 = int_to_ptr.vmem [resolvable:$true] %s317_s18 }
   0x9   :  { %s378_s19 = scalar_lea.vmem %s318_s18, 512  ;;  %p383_p1 = scmp.lt.s32.totalorder %s318_s18, %s318_s18 }
   0xa   :  { %39 = vadd.xlane.f32.xlu1 %v457_v2  ;;  %37 = vadd.xlane.f32.xlu0 %v462_v3  ;;  %p379_p0 = scmp.ne.s32.totalorder %s318_s18, %s378_s19  ;;  %p384_p2 = scmp.lt.s32.totalorder %s378_s19, %s378_s19 }
   0xc   :  { %p385_p3 = por %p384_p2, %p383_p1 }
   0xe   :  { %31 = vmax.xlane.f32.xlu1 %v457_v2  ;;  %29 = vmax.xlane.f32.xlu0 %v462_v3  ;;  %p386_p4 = pnand %p385_p3, %p379_p0 }
  0x1f   :  { %144 = vperm.xlu1 %377, %v51_v30  }
  0x23   :  { %149 = vperm.xlu1 %377, %v52_v31  }
  0x24   :  { %64 = vperm.xlu0 %376, %v46_v6  }
  0x27   :  { %154 = vperm.xlu1 %377, %v53_v32  }
  0x2b   :  { %159 = vperm.xlu1 %377, %v54_v33  }
  0x8f   :  { %v26_v9 = vpop.xlane.xlu1 %25  ;;  %v34_v10 = vpop.xlane.xlu0 %33 }
  0x90   :  { %v41_v12 = vmul.f32 0.0078125, %v34_v10 }
  0x92   :  { %v58_v16 = vsel %vm57_vm1, %v26_v9, %v41_v12 }
  0x93   :  { %v28_v13 = vpop.xlane.xlu1 %27  ;;  %v36_v14 = vpop.xlane.xlu0 %35 }
  0x94   :  { %v42_v15 = vmul.f32 0.0078125, %v36_v14 }
  0x96   :  { %v59_v17 = vsel %vm57_vm1, %v28_v13, %v42_v15 }
  0x97   :  { %v40_v18 = vpop.xlane.xlu1 %39  ;;  %v38_v19 = vpop.xlane.xlu0 %37  ;;  %v363_v20 = vpack.c.bf16 %v59_v17, %v58_v16 }
  0x98   :  { %v44_v21 = vmul.f32 0.0078125, %v40_v18  ;;  %v43_v22 = vmul.f32 0.0078125, %v38_v19 }
  0x99   :  { %364 = vmatpush3.bf16.msra.mxu0 %v363_v20 }
  0x9a   :  { %365 = vmatprep.subr.bf16.mxu0 %v402_v4 }
  0x9b   :  { %v32_v23 = vpop.xlane.xlu1 %31  ;;  %v30_v24 = vpop.xlane.xlu0 %29 }
  0x9c   :  { %v61_v25 = vsel %vm57_vm1, %v32_v23, %v44_v21  ;;  %v60_v26 = vsel %vm57_vm1, %v30_v24, %v43_v22 }
  0x9d   :  { %v366_v27 = vpack.c.bf16 %v61_v25, %v60_v26 }
  0x9f   :  { %367 = vmatpush3.bf16.msra.mxu0 %v366_v27  ;;  %v145_v42 = vpop.permute.xlu1 %144 }
  0xa2   :  { %352 = vmatmul.mubr.msk.f32.vlgmr.msra.gmra.mrb[0].mxu0 %vm67_vm2, %v45_v28 }
  0xa3   :  { %v65_v34 = vpop.permute.xlu0 %64  ;;  %v150_v43 = vpop.permute.xlu1 %149 }
  0xa7   :  { %v155_v50 = vpop.permute.xlu1 %154 }
  0xab   :  { %v160_v52 = vpop.permute.xlu1 %159 }
 0x175   :  { %v137_v35 = vpop.f32.mrb[0].mxu0 }
 0x176   :  { %v138_v36 = vadd.f32 %v137_v35, %v65_v34  ;;  %v353_v37 = vpop.f32.mrb[1].mxu0 }
 0x178   :  { %v141_v38 = vmax.f32 %v138_v36, 0.0 }
 0x17a   :  { %354 = vmatprep.subr.mxu1 %v141_v38 }
 0x17b   :  { %355 = vmatpush3.msra.mxu1 %v141_v38 }
 0x17c   :  { %357 = vmatmul.mubr.msk.f32.vlgmr.msra.gmra.mrb[0].mxu1 %vm162_vm3, %v48_v39 }
 0x17d   :  { %359 = vmatprep.mubr.msk.f32.mxu1 %vm162_vm3, %v49_v40 }
 0x180   :  { %360 = vmatmul.mubr.msk.f32.gmra.mrb[2].mxu1 %vm162_vm3, %v50_v41 }
 0x24f   :  { %v358_v44 = vpop.f32.mrb[0].mxu1 }
 0x250   :  { %v247_v45 = vadd.f32 %v358_v44, %v150_v43  ;;  %v241_v46 = vpop.f32.mrb[1].mxu1 }
 0x251   :  { %v242_v48 = vadd.f32 %v241_v46, %v145_v42 }
 0x252   :  { %266 = vrot.lane.b32.xlu1 %v247_v45, %s406_s17 }
 0x253   :  { %v361_v47 = vpop.f32.mrb[2].mxu1 }
 0x254   :  { %v251_v49 = vpop.f32.mrb[3].mxu1  ;;  %v257_v53 = vadd.f32 %v361_v47, %v160_v52 }
 0x255   :  { %v252_v51 = vadd.f32 %v251_v49, %v155_v50 }
 0x256   :  { %264 = vrot.lane.b32.xlu1 %v242_v48, %s406_s17 }
 0x25a   :  { %268 = vrot.lane.b32.xlu1 %v252_v51, %s406_s17 }
 0x25e   :  { %270 = vrot.lane.b32.xlu1 %v257_v53, %s406_s17 }
 0x2c4   :  { %v267_v54 = vpop.permute.xlu1 %266 }
 0x2c5   :  { %v277_v55 = vadd.f32 %v267_v54, %v247_v45 }
 0x2c7   :  { %v281_v56 = vmax.f32 %v277_v55, 0.0 }
 0x2c8   :  { %v265_v57 = vpop.permute.xlu1 %264 }
 0x2c9   :  { %v276_v58 = vadd.f32 %v265_v57, %v242_v48  ;;  %291 = vperm.xlu1 %377, %v281_v56  }
 0x2cb   :  { %v280_v59 = vmax.f32 %v276_v58, 0.0 }
 0x2cc   :  { %v269_v60 = vpop.permute.xlu1 %268 }
 0x2cd   :  { %v278_v61 = vadd.f32 %v269_v60, %v252_v51  ;;  %286 = vperm.xlu0 %376, %v280_v59  }
 0x2cf   :  { %v282_v62 = vmax.f32 %v278_v61, 0.0 }
 0x2d0   :  { %v271_v63 = vpop.permute.xlu1 %270 }
 0x2d1   :  { %v279_v4 = vadd.f32 %v271_v63, %v257_v53  ;;  %296 = vperm.xlu0 %376, %v282_v62  }
 0x2d3   :  { %v283_v5 = vmax.f32 %v279_v4, 0.0 }
 0x2d5   :  { %301 = vperm.xlu1 %377, %v283_v5  }
 0x348   :  { %v292_v6 = vpop.permute.xlu1 %291 }
 0x349   :  { %v305_v7 = vmul.f32 %v292_v6, %v450_v1 }
 0x34b   :  { %309 = vst [vmem:[#allocation2 + $0x8] sm:$0xff] %v305_v7 }
 0x34c   :  { %v287_v8 = vpop.permute.xlu0 %286 }
 0x34d   :  { %v304_v9 = vmul.f32 %v287_v8, %v443_v0 }
 0x34f   :  { %308 = vst [vmem:[#allocation2] sm:$0xff] %v304_v9 }
 0x350   :  { %v297_v10 = vpop.permute.xlu0 %296 }
 0x351   :  { %v306_v11 = vmul.f32 %v297_v10, %v462_v3 }
 0x353   :  { %310 = vst [vmem:[#allocation2 + $0x10] sm:$0xff] %v306_v11 }
 0x354   :  { %v302_v12 = vpop.permute.xlu1 %301 }
 0x355   :  { %v307_v13 = vmul.f32 %v302_v12, %v457_v2 }
 0x357   :  { %311 = vst [vmem:[#allocation2 + $0x18] sm:$0xff] %v307_v13 }
 0x358   :  { %389 = shalt.err (!%p386_p4)
}
 0x359   :  { %s390_s22 = scalar_lea.hbm %s523_s5, 512 }
 0x35a   :  { %p391_p5 = scmp.ne.s32.totalorder %s523_s5, %s390_s22  ;;  %p394_p6 = scmp.lt.u32.totalorder %s390_s22, %s523_s5 }
 0x35c   :  { %p396_p7 = pnand %p394_p6, %p391_p5 }
 0x35e   :  { %399 = shalt.err (!%p396_p7)
}
 0x35f   :  { %s408_s27 = smov 128   ;;  %s409_s0 = smov 8  }
 0x360   :  { %323 = dma.vmem_to_hbm [thread:$0]  %s318_s18, 512, %s523_s5, [#allocation3], %s408_s27, %s408_s27, %s409_s0  }
 0x361   :  { %400 = dma.done.wait [#allocation3], 512  }
 0x362   :  { %401 = vsyncadd [#allocation3], 4294966784 }
 0x363   :  { %327 = vsyncpa [#allocation3], 1 }

</bundles_post_ra>
